<compile_context>
chip_gen: v5e
topology: v5e:2x2
jax: 0.10.0
libtpu: 0.0.40
codegen_flags: <defaults>
</compile_context>

<pallas_src>
import math
import functools

import jax
import jax.numpy as jnp
from jax.experimental import pallas as pl
from jax.experimental.pallas import tpu as pltpu


def _linear_single_k_kernel(x_ref, w_ref, b_ref, o_ref):
    # x_ref: (tm, K)   w_ref: (K, tn)   b_ref: (1, tn) f32   o_ref: (tm, tn)
    acc = jnp.dot(x_ref[...], w_ref[...], preferred_element_type=jnp.float32)
    o_ref[...] = (acc + b_ref[...]).astype(o_ref.dtype)


def _linear_multi_k_kernel(x_ref, w_ref, b_ref, o_ref, acc_ref):
    # x_ref: (tm, tk)  w_ref: (tk, tn)  b_ref: (1, tn)  o_ref/acc_ref: (tm, tn)
    k = pl.program_id(2)

    @pl.when(k == 0)
    def _init():
        # Fold the bias into the accumulator init -> finalize is a pure store.
        acc_ref[...] = jnp.broadcast_to(b_ref[...], acc_ref.shape)

    acc_ref[...] += jnp.dot(x_ref[...], w_ref[...],
                            preferred_element_type=jnp.float32)

    @pl.when(k == pl.num_programs(2) - 1)
    def _finalize():
        o_ref[...] = acc_ref[...].astype(o_ref.dtype)


def _round_up(x, m):
    return ((x + m - 1) // m) * m


@functools.partial(jax.jit, static_argnames=("compute_dtype", "tm", "tn", "tk"))
def lr_text_forward(feature, weight, bias, *, compute_dtype=jnp.bfloat16,
                    tm=None, tn=None, tk=None):
    """y = feature @ weight.T + bias, matching nn.Linear semantics.

    feature: (B, indim)        weight: (outdim, indim)        bias: (outdim,)
    compute_dtype: dtype fed to the MXU (default bf16; accumulation is f32).
    """
    B, K = feature.shape
    N, Kw = weight.shape
    assert K == Kw, "weight/feature indim mismatch"
    out_dtype = feature.dtype

    # One-time layout/dtype prep (in production: do once at parameter load).
    x = feature.astype(compute_dtype)
    w = weight.T.astype(compute_dtype)          # (K, N): canonical MXU layout
    b2 = bias.astype(jnp.float32).reshape(1, N)

    itemsize = jnp.dtype(compute_dtype).itemsize
    k_cap = 2048 if itemsize <= 2 else 1024

    # Tile selection. No padding on M/N: boundary blocks handle the edges, and
    # full-dim blocks are always legal regardless of (8,128)/(16,128) alignment.
    tm = tm if tm is not None else min(B, 512)
    tn = tn if tn is not None else min(N, 512)
    if tk is None:
        if K <= k_cap:
            tk = K                               # single K step, no K padding
        else:
            # Largest multiple of 128 dividing the 128-padded K, capped.
            Kp128 = _round_up(K, 128)
            tk = 128
            for cand in range(k_cap, 127, -128):
                if Kp128 % cand == 0:
                    tk = cand
                    break

    Kp = _round_up(K, tk)
    if Kp != K:
        # Zero-pad only the reduction axis (zeros contribute nothing).
        x = jnp.pad(x, ((0, 0), (0, Kp - K)))
        w = jnp.pad(w, ((0, Kp - K), (0, 0)))

    gm, gn, gk = pl.cdiv(B, tm), pl.cdiv(N, tn), Kp // tk

    cost = pl.CostEstimate(
        flops=2 * B * K * N,
        transcendentals=0,
        # Weight streamed once per M tile, activations once per N tile.
        bytes_accessed=int(itemsize * (B * Kp * gn + Kp * N * gm)
                           + 4 * N * gm
                           + jnp.dtype(out_dtype).itemsize * B * N),
    )
    compiler_params = pltpu.CompilerParams(
        dimension_semantics=(("parallel", "parallel") if gk == 1
                             else ("parallel", "parallel", "arbitrary")),
        # Above v5e's 16 MiB scoped default, below v7x's 64 MiB/TC physical.
        vmem_limit_bytes=48 * 1024 * 1024,
    )

    if gk == 1:
        out = pl.pallas_call(
            _linear_single_k_kernel,
            out_shape=jax.ShapeDtypeStruct((B, N), out_dtype),
            grid=(gm, gn),
            in_specs=[
                pl.BlockSpec((tm, tk), lambda i, j: (i, 0)),   # activations
                pl.BlockSpec((tk, tn), lambda i, j: (0, j)),   # weight (K, N)
                pl.BlockSpec((1, tn), lambda i, j: (0, j)),    # bias row
            ],
            out_specs=pl.BlockSpec((tm, tn), lambda i, j: (i, j)),
            compiler_params=compiler_params,
            cost_estimate=cost,
        )(x, w, b2)
    else:
        out = pl.pallas_call(
            _linear_multi_k_kernel,
            out_shape=jax.ShapeDtypeStruct((B, N), out_dtype),
            grid=(gm, gn, gk),
            in_specs=[
                pl.BlockSpec((tm, tk), lambda i, j, k: (i, k)),  # activations
                pl.BlockSpec((tk, tn), lambda i, j, k: (k, j)),  # weight (K,N)
                pl.BlockSpec((1, tn), lambda i, j, k: (0, j)),   # bias row
            ],
            out_specs=pl.BlockSpec((tm, tn), lambda i, j, k: (i, j)),
            scratch_shapes=[pltpu.VMEM((tm, tn), jnp.float32)],
            compiler_params=compiler_params,
            cost_estimate=cost,
        )(x, w, b2)

    return out


def init_lr_text_params(key, indim, outdim):
    """Deterministic init mirroring nn.Linear default (uniform +/- 1/sqrt(indim))."""
    kw, kb = jax.random.split(key)
    bound = 1.0 / math.sqrt(indim)
    weight = jax.random.uniform(kw, (outdim, indim), jnp.float32, -bound, bound)
    bias = jax.random.uniform(kb, (outdim,), jnp.float32, -bound, bound)
    return weight, bias


def _bf16_rounded_ref(feature, weight, bias):
    """Reference with inputs rounded to bf16 (products exact, f32 accumulate)."""
    f = feature.astype(jnp.bfloat16).astype(jnp.float32)
    w = weight.astype(jnp.bfloat16).astype(jnp.float32)
    return f @ w.T + bias


if __name__ == "__main__":
    key = jax.random.PRNGKey(0)
    k_x, k_p = jax.random.split(key)

    # --- Small demo shape (GEMV-like regime: tm = B, single tile, single K) ---
    batch, indim, outdim = 8, 32, 16
    feature = jax.random.normal(k_x, (batch, indim), jnp.float32)
    weight, bias = init_lr_text_params(k_p, indim, outdim)

    y = lr_text_forward(feature, weight, bias)            # default bf16 MXU path
    jax.block_until_ready(y)
    assert y.shape == (batch, outdim)
    y_ref_bf = _bf16_rounded_ref(feature, weight, bias)
    assert jnp.allclose(y, y_ref_bf, atol=1e-3, rtol=1e-3), "bf16 path mismatch"

    # f32 fallback path (loose tolerance: reference/kernel matmul passes may
    # use different internal MXU precision for f32 operands).
    y32 = lr_text_forward(feature, weight, bias, compute_dtype=jnp.float32)
    jax.block_until_ready(y32)
    y_ref = feature @ weight.T + bias
    assert jnp.allclose(y32, y_ref, atol=2e-2, rtol=2e-2), "f32 path mismatch"

    # --- Unaligned shapes: full-dim blocks, no wrapper padding on M/N/K ------
    k_xu, k_pu = jax.random.split(jax.random.PRNGKey(2))
    Bu, Ku, Nu = 10, 96, 200
    feat_u = jax.random.normal(k_xu, (Bu, Ku), jnp.float32)
    w_u, b_u = init_lr_text_params(k_pu, Ku, Nu)
    y_u = lr_text_forward(feat_u, w_u, b_u)
    jax.block_until_ready(y_u)
    assert y_u.shape == (Bu, Nu)
    assert jnp.allclose(y_u, _bf16_rounded_ref(feat_u, w_u, b_u),
                        atol=1e-3, rtol=1e-3), "unaligned bf16 mismatch"
    y_u32 = lr_text_forward(feat_u, w_u, b_u, compute_dtype=jnp.float32)
    jax.block_until_ready(y_u32)
    assert jnp.allclose(y_u32, feat_u @ w_u.T + b_u,
                        atol=2e-2, rtol=2e-2), "unaligned f32 mismatch"

    # --- Multi-K accumulation + boundary N block + bias-in-init path ---------
    k_x2, k_p2 = jax.random.split(jax.random.PRNGKey(1))
    B2, K2, N2 = 320, 4096, 520            # tk=2048 -> 2 K steps; gn=2 (boundary)
    feature2 = jax.random.normal(k_x2, (B2, K2), jnp.float32)
    weight2, bias2 = init_lr_text_params(k_p2, K2, N2)
    y2 = lr_text_forward(feature2, weight2, bias2)
    jax.block_until_ready(y2)
    assert y2.shape == (B2, N2)
    assert jnp.allclose(y2, _bf16_rounded_ref(feature2, weight2, bias2),
                        atol=2e-3, rtol=2e-3), "multi-K bf16 mismatch"

    print("KERNEL_OK")
</pallas_src>

<mosaic_0001>
module attributes {stable_mosaic.version = 11 : i64} {
  func.func @_linear_single_k_kernel(%arg0: i32, %arg1: i32, %arg2: memref<8x32xbf16, #tpu.memory_space<vmem>>, %arg3: memref<32x16xbf16, #tpu.memory_space<vmem>>, %arg4: memref<1x16xf32, #tpu.memory_space<vmem>>, %arg5: memref<8x16xf32, #tpu.memory_space<vmem>>) attributes {dimension_semantics = [#tpu.dimension_semantics<parallel>, #tpu.dimension_semantics<parallel>], iteration_bounds = array<i64: 1, 1>, scalar_prefetch = 0 : i64, scratch_operands = 0 : i64, tpu.core_type = #tpu.core_type<tc>, window_params = [{transform_indices = @transform_0, window_bounds = array<i64: 8, 32>}, {transform_indices = @transform_1, window_bounds = array<i64: 32, 16>}, {transform_indices = @transform_2, window_bounds = array<i64: 1, 16>}, {transform_indices = @transform_3, window_bounds = array<i64: 8, 16>}]} {
    %c0 = arith.constant 0 : index
    %c0_0 = arith.constant 0 : index
    %0 = vector.load %arg2[%c0, %c0_0] : memref<8x32xbf16, #tpu.memory_space<vmem>>, vector<8x32xbf16>
    %c0_1 = arith.constant 0 : index
    %c0_2 = arith.constant 0 : index
    %1 = vector.load %arg3[%c0_1, %c0_2] : memref<32x16xbf16, #tpu.memory_space<vmem>>, vector<32x16xbf16>
    %cst = arith.constant dense<0.000000e+00> : vector<8x16xf32>
    %2 = tpu.matmul %0, %1, %cst {dimension_numbers = #tpu.dot_dimension_numbers<[1], [0], [0], [1], [0, 0, 1, 1], [], []>} : vector<8x32xbf16>, vector<32x16xbf16>, vector<8x16xf32> -> vector<8x16xf32>
    %c0_3 = arith.constant 0 : index
    %c0_4 = arith.constant 0 : index
    %3 = vector.load %arg4[%c0_3, %c0_4] : memref<1x16xf32, #tpu.memory_space<vmem>>, vector<1x16xf32>
    %4 = vector.broadcast %3 : vector<1x16xf32> to vector<8x16xf32>
    %5 = arith.addf %2, %4 : vector<8x16xf32>
    %c0_5 = arith.constant 0 : index
    %c0_6 = arith.constant 0 : index
    %6 = vector.load %arg5[%c0_5, %c0_6] : memref<8x16xf32, #tpu.memory_space<vmem>>, vector<8x16xf32>
    tpu.vector_store %arg5[%c0_5, %c0_6], %5 {strides = array<i32>} : memref<8x16xf32, #tpu.memory_space<vmem>>, vector<8x16xf32>,
    return
  }
  func.func @transform_0(%arg0: i32, %arg1: i32) -> (i32, i32) {
    %c0_i32 = arith.constant 0 : i32
    %c0_i32_0 = arith.constant 0 : i32
    return %arg0, %c0_i32 : i32, i32
  }
  func.func @transform_1(%arg0: i32, %arg1: i32) -> (i32, i32) {
    %c0_i32 = arith.constant 0 : i32
    %c0_i32_0 = arith.constant 0 : i32
    return %c0_i32, %arg1 : i32, i32
  }
  func.func @transform_2(%arg0: i32, %arg1: i32) -> (i32, i32) {
    %c0_i32 = arith.constant 0 : i32
    %c0_i32_0 = arith.constant 0 : i32
    return %c0_i32, %arg1 : i32, i32
  }
  func.func @transform_3(%arg0: i32, %arg1: i32) -> (i32, i32) {
    %c0_i32 = arith.constant 0 : i32
    return %arg0, %arg1 : i32, i32
  }
}

</mosaic_0001>

<bundles_post_ra>
// kernel: lr_text_forward.1
= control target key start
LH: loop header
LB: loop body
LE: loop exit
PB: predicated region body
PF: predicated region fallthrough
CT: control target
= control target key end

     0   :  { %s147_s0 = inlined_call_operand.vmem [shape: bf16[8,32], index: 0, kind: input, shape index: {}]   ;;  %s148_s1 = inlined_call_operand.vmem [shape: bf16[32,16], index: 1, kind: input, shape index: {}]   ;;  %s149_s2 = inlined_call_operand.vmem [shape: f32[1,16], index: 2, kind: input, shape index: {}]   ;;  %s150_s3 = inlined_call_operand.hbm [shape: f32[8,16], index: 3, kind: output, shape index: {}]  }
   0x1   :  { %v82_v0 = vld [vmem:[%s148_s1 + $0x8] sm:$0xff] }
   0x2   :  { %8 = vsyncpa [#allocation3], 0  ;;  %47 = vmatpush.bf16.msra.mxu0 %v82_v0  ;;  %v81_v1 = vld [vmem:[%s148_s1] sm:$0xff]  ;;  %vm37_vm0 = vcmask 261120   ;;  %s111_s20 = smov [#allocation2]   ;;  %s63_s24 = sshll.u32 %s150_s3, 4  ;;  %s64_s24 = int_to_ptr.hbm [resolvable:$true] %s63_s24 }
   0x3   :  { %v16_v2 = vld [vmem:[%s147_s0] sm:$0xf]  ;;  %s61_s21 = sshll.u32 %s111_s20, 4  ;;  %vm54_vm1 = vcmask 130048   ;;  %s62_s21 = int_to_ptr.vmem [resolvable:$true] %s61_s21 }
   0x4   :  { %v84_v3 = vld [vmem:[%s149_s2] ss:$0 sm:$0xff] }
   0x6   :  { %48 = vmatpush.bf16.msra.mxu0 %v81_v1 }
   0x9   :  { %80 = vmatmul.msk.bf16.vlgmr.msra.gmra.mxu0 %vm37_vm0, %v16_v2 }
  0x86   :  { %v50_v4 = vpop.f32.mrf.mxu0 }
  0x87   :  { %v51_v5 = vadd.f32 %v84_v3, %v50_v4 }
  0x89   :  { %55 = vst.msk [vmem:[#allocation2] sm:$0xff] %vm54_vm1, %v51_v5 }
  0x8a   :  { %66 = dma.vmem_to_hbm [thread:$0]  %s62_s21, 128, %s64_s24, [#allocation3]  }
  0x8e   :  { %v52_v6 = vpop.f32.mrf.mxu0 }
  0x8f   :  { %109 = dma.done.wait [#allocation3], 128  }
  0x90   :  { %110 = vsyncadd [#allocation3], 4294967168 }
  0x91   :  { %71 = vsyncpa [#allocation3], 1 }

</bundles_post_ra>
